<compile_context>
chip_gen: v7x
topology: tpu7x:2x2x1
jax: 0.10.0
libtpu: 0.0.40
codegen_flags: <defaults>
</compile_context>

<pallas_src>
import functools

import jax
import jax.numpy as jnp
from jax import lax
from jax.experimental import pallas as pl
from jax.experimental.pallas import tpu as pltpu


def _focal_loss_kernel(logits_ref, targets_ref, out_ref, *,
                       alpha, gamma, label_smoothing, num_classes, int_targets):
    x = logits_ref[...].astype(jnp.float32)             # (TB, C), cast in VMEM only
    TB, C = x.shape

    # Row-wise softmax statistics (class axis = lane axis).
    m = jnp.max(x, axis=-1, keepdims=True)               # (TB, 1)
    z = x - m
    ez = jnp.exp(z)
    denom = jnp.sum(ez, axis=-1, keepdims=True)          # (TB, 1)
    log_denom = jnp.log(denom)

    if int_targets:
        tgt = targets_ref[...]                            # (TB, 1) int32
        col = lax.broadcasted_iota(jnp.int32, (TB, C), 1)
        one_hot = (col == tgt).astype(jnp.float32)
        # Only the target logit is needed: no full p / log-p tiles.
        z_tgt = jnp.sum(one_hot * z, axis=-1, keepdims=True)
        logp_tgt = z_tgt - log_denom
        p_tgt = jnp.exp(logp_tgt)
        if label_smoothing > 0.0:
            ls = float(label_smoothing)
            ls_c = ls / num_classes
            sum_logp = jnp.sum(z, axis=-1, keepdims=True) - num_classes * log_denom
            pt = (1.0 - ls) * p_tgt + ls_c                # sum_c softmax == 1
            ce = -(1.0 - ls) * logp_tgt - ls_c * sum_logp
        else:
            pt = p_tgt
            ce = -logp_tgt
        # sum_c t == 1 exactly -> alpha weight is a compile-time scalar.
        alpha_w = jnp.float32(alpha + (1.0 - alpha) * (num_classes - 1))
    else:
        # Soft / one-hot (B, C) targets; PyTorch path uses label_smoothing = 0 here.
        t = targets_ref[...].astype(jnp.float32)
        logp = z - log_denom
        p = ez / denom
        pt = jnp.sum(t * p, axis=-1, keepdims=True)
        ce = -jnp.sum(t * logp, axis=-1, keepdims=True)
        sum_t = jnp.sum(t, axis=-1, keepdims=True)
        alpha_w = alpha * sum_t + (1.0 - alpha) * (num_classes - sum_t)

    # Focal weight: clamp 1-pt (rounding can push pt past 1); integer gamma avoids
    # the exp(gamma*log(.)) EUP chain.
    one_minus_pt = jnp.maximum(1.0 - pt, 0.0)
    g = float(gamma)
    if g == int(g) and 0 <= int(g) <= 8:
        focal_w = one_minus_pt ** int(g)                  # integer_pow -> VPU multiplies
    else:
        focal_w = jnp.power(one_minus_pt, jnp.float32(g))

    loss = focal_w * ce                                    # (TB, 1)
    if alpha > 0:
        loss = alpha_w * loss

    out_ref[...] = loss


def _choose_tile_b(num_classes, itemsize):
    """Largest batch tile with one logits buffer around ~2 MiB (double-buffered
    working set stays well under v5e/v6e/v7x scoped-VMEM defaults), capped at 1024."""
    rows = (2 * 1024 * 1024) // max(1, num_classes * itemsize)
    return max(8, min(1024, (rows // 8) * 8))


def focal_loss(inputs, targets, *, alpha=0.25, gamma=2.0,
               reduction='mean', label_smoothing=0.0, tile_b=None):
    """Pallas implementation of FocalLoss.forward.

    inputs:  (B, C) logits (pre-softmax), any float dtype (kept native in HBM)
    targets: (B,) integer class indices OR (B, C) one-hot / soft targets
    """
    B, C = inputs.shape
    int_targets = (targets.ndim == 1)

    if int_targets:
        tgt = targets.astype(jnp.int32).reshape(B, 1)
        ls = float(label_smoothing)
    else:
        tgt = targets
        ls = 0.0   # matches PyTorch module: no label smoothing for soft targets

    if tile_b is None:
        tile_b = _choose_tile_b(C, jnp.dtype(inputs.dtype).itemsize)
    tile_b = int(tile_b)
    # Sublane rule: block rows must be a multiple of 8 OR cover the full batch.
    if tile_b >= B:
        tile_b = B
    else:
        tile_b = max(8, (tile_b // 8) * 8)
    num_tiles = pl.cdiv(B, tile_b)
    # TODO(synk): add class-axis tiling for models where a single (tile_b, C) row
    # block of logits cannot fit in VMEM (e.g. very large vocabularies).

    kernel = functools.partial(
        _focal_loss_kernel,
        alpha=float(alpha), gamma=float(gamma), label_smoothing=ls,
        num_classes=C, int_targets=int_targets)

    tgt_block = (tile_b, 1) if int_targets else (tile_b, C)

    per_sample = pl.pallas_call(
        kernel,
        out_shape=jax.ShapeDtypeStruct((B, 1), jnp.float32),
        grid=(num_tiles,),
        in_specs=[pl.BlockSpec((tile_b, C), lambda i: (i, 0)),
                  pl.BlockSpec(tgt_block, lambda i: (i, 0))],
        out_specs=pl.BlockSpec((tile_b, 1), lambda i: (i, 0)),
        compiler_params=pltpu.CompilerParams(
            dimension_semantics=("parallel",),
            vmem_limit_bytes=32 * 1024 * 1024),
    )(inputs, tgt)   # native dtype in -> no extra HBM traffic

    per_sample = per_sample.reshape(-1)     # (B,)
    if reduction == 'mean':
        return per_sample.mean()
    if reduction == 'sum':
        return per_sample.sum()
    return per_sample


def _focal_loss_ref(inputs, targets, *, alpha=0.25, gamma=2.0,
                    reduction='mean', label_smoothing=0.0):
    """Pure-JAX reference mirroring the PyTorch forward."""
    B, C = inputs.shape
    x = inputs.astype(jnp.float32)
    if targets.ndim == 1:
        one_hot = jax.nn.one_hot(targets, C, dtype=jnp.float32)
        t = one_hot * (1.0 - label_smoothing) + label_smoothing / C
    else:
        t = targets.astype(jnp.float32)   # soft targets: PyTorch path uses ls = 0
    logp = jax.nn.log_softmax(x, axis=1)
    p = jnp.exp(logp)
    pt = jnp.sum(t * p, axis=1)
    focal_w = (1.0 - pt) ** gamma
    ce = -jnp.sum(t * logp, axis=1)
    loss = focal_w * ce
    if alpha > 0:
        alpha_w = jnp.sum(t * alpha + (1.0 - t) * (1.0 - alpha), axis=1)
        loss = alpha_w * loss
    if reduction == 'mean':
        return loss.mean()
    if reduction == 'sum':
        return loss.sum()
    return loss


if __name__ == "__main__":
    key = jax.random.PRNGKey(0)
    k1, k2, k3, k4, k5 = jax.random.split(key, 5)

    # 1) integer targets, default config (alpha=0.25, gamma=2.0, mean)
    B, C = 8, 32
    logits = jax.random.normal(k1, (B, C), dtype=jnp.float32)
    targets = jax.random.randint(k2, (B,), 0, C, dtype=jnp.int32)
    out = focal_loss(logits, targets, alpha=0.25, gamma=2.0,
                     reduction='mean', label_smoothing=0.0)
    out = jax.block_until_ready(out)
    ref = _focal_loss_ref(logits, targets, alpha=0.25, gamma=2.0,
                          reduction='mean', label_smoothing=0.0)
    assert jnp.allclose(out, ref, rtol=2e-4, atol=1e-5), (out, ref)

    # 2) label smoothing + per-sample ('none') reduction
    out_ns = focal_loss(logits, targets, reduction='none', label_smoothing=0.1)
    out_ns = jax.block_until_ready(out_ns)
    ref_ns = _focal_loss_ref(logits, targets, reduction='none', label_smoothing=0.1)
    assert jnp.allclose(out_ns, ref_ns, rtol=2e-4, atol=1e-5), (out_ns, ref_ns)

    # 3) multi-tile batch grid + sum reduction, bf16 logits fed natively
    B2 = 48
    logits2 = jax.random.normal(k3, (B2, C), dtype=jnp.float32).astype(jnp.bfloat16)
    targets2 = jax.random.randint(k4, (B2,), 0, C, dtype=jnp.int32)
    out2 = focal_loss(logits2, targets2, reduction='sum', tile_b=16)
    out2 = jax.block_until_ready(out2)
    ref2 = _focal_loss_ref(logits2.astype(jnp.float32), targets2, reduction='sum')
    assert jnp.allclose(out2, ref2, rtol=1e-3, atol=1e-3), (out2, ref2)

    # 4) soft-target path
    soft = jax.nn.softmax(jax.random.normal(k5, (B, C), dtype=jnp.float32), axis=-1)
    out3 = focal_loss(logits, soft, reduction='mean')
    out3 = jax.block_until_ready(out3)
    ref3 = _focal_loss_ref(logits, soft, reduction='mean')
    assert jnp.allclose(out3, ref3, rtol=2e-4, atol=1e-5), (out3, ref3)

    print("KERNEL_OK")
</pallas_src>

<mosaic_0001>
module attributes {stable_mosaic.version = 11 : i64} {
  func.func @_focal_loss_kernel(%arg0: i32, %arg1: memref<8x32xf32, #tpu.memory_space<vmem>>, %arg2: memref<8x1xi32, #tpu.memory_space<vmem>>, %arg3: memref<8x1xf32, #tpu.memory_space<vmem>>) attributes {dimension_semantics = [#tpu.dimension_semantics<parallel>], iteration_bounds = array<i64: 1>, scalar_prefetch = 0 : i64, scratch_operands = 0 : i64, tpu.core_type = #tpu.core_type<tc>, window_params = [{transform_indices = @transform_0, window_bounds = array<i64: 8, 32>}, {transform_indices = @transform_1, window_bounds = array<i64: 8, 1>}, {transform_indices = @transform_2, window_bounds = array<i64: 8, 1>}]} {
    %c0 = arith.constant 0 : index
    %c0_0 = arith.constant 0 : index
    %0 = vector.load %arg1[%c0, %c0_0] : memref<8x32xf32, #tpu.memory_space<vmem>>, vector<8x32xf32>
    %cst = arith.constant dense<0xFF800000> : vector<8xf32>
    %1 = vector.multi_reduction <maximumf>, %0, %cst [1] : vector<8x32xf32> to vector<8xf32>
    %2 = vector.shape_cast %1 : vector<8xf32> to vector<8x1xf32>
    %3 = vector.broadcast %2 : vector<8x1xf32> to vector<8x32xf32>
    %4 = arith.subf %0, %3 : vector<8x32xf32>
    %5 = math.exp %4 : vector<8x32xf32>
    %cst_1 = arith.constant dense<0.000000e+00> : vector<8xf32>
    %6 = vector.multi_reduction <add>, %5, %cst_1 [1] : vector<8x32xf32> to vector<8xf32>
    %7 = vector.shape_cast %6 : vector<8xf32> to vector<8x1xf32>
    %8 = math.log %7 : vector<8x1xf32>
    %c0_2 = arith.constant 0 : index
    %c0_3 = arith.constant 0 : index
    %9 = vector.load %arg2[%c0_2, %c0_3] : memref<8x1xi32, #tpu.memory_space<vmem>>, vector<8x1xi32>
    %10 = tpu.iota {dimensions = array<i32: 1>} : vector<8x32xi32>
    %11 = vector.broadcast %9 : vector<8x1xi32> to vector<8x32xi32>
    %12 = arith.cmpi eq, %10, %11 : vector<8x32xi32>
    %13 = arith.extui %12 : vector<8x32xi1> to vector<8x32xi32>
    %14 = arith.sitofp %13 : vector<8x32xi32> to vector<8x32xf32>
    %15 = arith.mulf %14, %4 : vector<8x32xf32>
    %cst_4 = arith.constant dense<0.000000e+00> : vector<8xf32>
    %16 = vector.multi_reduction <add>, %15, %cst_4 [1] : vector<8x32xf32> to vector<8xf32>
    %17 = vector.shape_cast %16 : vector<8xf32> to vector<8x1xf32>
    %18 = arith.subf %17, %8 : vector<8x1xf32>
    %19 = math.exp %18 : vector<8x1xf32>
    %cst_5 = arith.constant 0.000000e+00 : f32
    %20 = vector.broadcast %cst_5 : f32 to vector<8x1xf32>
    %21 = arith.subf %20, %18 : vector<8x1xf32>
    %cst_6 = arith.constant 1.000000e+00 : f32
    %22 = vector.broadcast %cst_6 : f32 to vector<8x1xf32>
    %23 = arith.subf %22, %19 : vector<8x1xf32>
    %cst_7 = arith.constant 0.000000e+00 : f32
    %24 = vector.broadcast %cst_7 : f32 to vector<8x1xf32>
    %25 = arith.maximumf %23, %24 : vector<8x1xf32>
    %26 = arith.mulf %25, %25 : vector<8x1xf32>
    %27 = arith.mulf %26, %21 : vector<8x1xf32>
    %cst_8 = arith.constant 2.350000e+01 : f32
    %28 = vector.broadcast %cst_8 : f32 to vector<8x1xf32>
    %29 = arith.mulf %28, %27 : vector<8x1xf32>
    %c0_9 = arith.constant 0 : index
    %c0_10 = arith.constant 0 : index
    %30 = vector.load %arg3[%c0_9, %c0_10] : memref<8x1xf32, #tpu.memory_space<vmem>>, vector<8x1xf32>
    tpu.vector_store %arg3[%c0_9, %c0_10], %29 {strides = array<i32>} : memref<8x1xf32, #tpu.memory_space<vmem>>, vector<8x1xf32>,
    return
  }
  func.func @transform_0(%arg0: i32) -> (i32, i32) {
    %c0_i32 = arith.constant 0 : i32
    %c0_i32_0 = arith.constant 0 : i32
    return %arg0, %c0_i32 : i32, i32
  }
  func.func @transform_1(%arg0: i32) -> (i32, i32) {
    %c0_i32 = arith.constant 0 : i32
    %c0_i32_0 = arith.constant 0 : i32
    return %arg0, %c0_i32 : i32, i32
  }
  func.func @transform_2(%arg0: i32) -> (i32, i32) {
    %c0_i32 = arith.constant 0 : i32
    %c0_i32_0 = arith.constant 0 : i32
    return %arg0, %c0_i32 : i32, i32
  }
}

</mosaic_0001>

<bundles_post_ra>
// kernel: tpu_custom_call.1
= control target key start
LH: loop header
LB: loop body
LE: loop exit
PB: predicated region body
PF: predicated region fallthrough
CT: control target
= control target key end

     0   :  { %vm12_vm0 = vcmask 261120   ;;  %v62_v1 = vmov 0   ;;  %v25_v6 = vlaneseq  ;;  %v63_v10 = vmov 0.0   ;;  %s91_s0 = inlined_call_operand.vmem [shape: f32[8,32], index: 0, kind: input, shape index: {}]   ;;  %s92_s1 = inlined_call_operand.vmem [shape: s32[8,1], index: 1, kind: input, shape index: {}]   ;;  %s93_s2 = inlined_call_operand.vmem [shape: f32[8,1], index: 2, kind: output, shape index: {}]  }
   0x1   :  { %v11_v0 = vld [vmem:[%s91_s0] sm:$0xff]  ;;  %55 = vset.pattern.permute.xlu0 %v62_v1  ;;  %vm46_vm2 = vcmask 7168  }
   0x2   :  { %v13_v2 = vsel %vm12_vm0, %v11_v0, -inf  ;;  %v24_v3 = vld [vmem:[%s92_s1] sm:$0xff]  ;;  %v26_v8 = vand.u32 127, %v25_v6 }
   0x3   :  { %14 = vmax.xlane.f32.xlu0 %v13_v2 }
  0x19   :  { %28 = vperm.xlu0 %55, %v24_v3  }
  0x90   :  { %v15_v4 = vpop.xlane.xlu0 %14 }
  0x91   :  { %v16_v5 = vsub.f32 %v11_v0, %v15_v4 }
  0x93   :  { %v17_v7 = vmul.f32 1.442695, %v16_v5 }
  0x95   :  { %56 = vpow2.f32 %v17_v7 }
  0x98   :  { %v29_v9 = vpop.permute.xlu0 %28 }
  0x99   :  { %vm30_vm1 = vcmp.eq.s32.totalorder %v26_v8, %v29_v9 }
  0x9a   :  { %v52_v11 = vsel %vm30_vm1, 1.0, %v63_v10 }
  0x9b   :  { %v33_v14 = vmul.f32 %v52_v11, %v16_v5 }
  0x9d   :  { %v34_v15 = vsel %vm12_vm0, %v33_v14, 0.0 }
  0x9f   :  { %v57_v12 = vpop.eup %56 }
  0xa0   :  { %v19_v13 = vsel %vm12_vm0, %v57_v12, 0.0 }
  0xa1   :  { %20 = vadd.xlane.f32.xlu1 %v19_v13 }
  0xa5   :  { %35 = vadd.xlane.f32.xlu1 %v34_v15 }
 0x12e   :  { %v21_v16 = vpop.xlane.xlu1 %20 }
 0x12f   :  { %58 = vlog2.f32 %v21_v16 }
 0x132   :  { %v36_v19 = vpop.xlane.xlu1 %35 }
 0x139   :  { %v59_v17 = vpop.eup %58 }
 0x13a   :  { %v23_v18 = vmul.f32 0.6931472, %v59_v17 }
 0x13c   :  { %v37_v20 = vsub.f32 %v36_v19, %v23_v18 }
 0x13e   :  { %v38_v21 = vmul.f32 1.442695, %v37_v20  ;;  %v40_v25 = vsub.f32 0.0, %v37_v20 }
 0x140   :  { %60 = vpow2.f32 %v38_v21 }
 0x14a   :  { %v61_v22 = vpop.eup %60 }
 0x14b   :  { %v41_v23 = vsub.f32 1.0, %v61_v22 }
 0x14d   :  { %v42_v24 = vmax.f32 %v41_v23, 0.0 }
 0x14f   :  { %v43_v26 = vmul.f32 %v42_v24, %v42_v24 }
 0x151   :  { %v44_v27 = vmul.f32 %v43_v26, %v40_v25 }
 0x153   :  { %v45_v28 = vmul.f32 23.5, %v44_v27 }
 0x155   :  { %47 = vst.msk [vmem:[%s93_s2] sm:$0xff] %vm46_vm2, %v45_v28 }

</bundles_post_ra>
